<compile_context>
chip_gen: v7x
topology: tpu7x:2x2x1
jax: 0.10.0
libtpu: 0.0.40
codegen_flags: <defaults>
</compile_context>

<pallas_src>
import functools
import math

import jax
import jax.numpy as jnp
from jax.experimental import pallas as pl
from jax.experimental.pallas import tpu as pltpu


_TILE_TARGET_BYTES = 4 * 1024 * 1024   # ~4 MiB x-tile per grid step
_VMEM_LIMIT_BYTES = 32 * 1024 * 1024   # safe on v5e/v6e (128 MiB phys) and v7x (64 MiB)
_SPLIT_MIN_BYTES = 1 * 1024 * 1024     # only force >=2 grid steps above this size


def _make_pe(seq_len, d_model, max_len, reverse, dtype):
    """Sinusoidal positional-encoding table rows [0, seq_len), torch-compatible."""
    assert d_model % 2 == 0, "d_model must be even (sin/cos interleave)"
    # torch builds the table at length L = max(max_len, seq_len) (extend_pe) and the
    # forward slices the first seq_len rows.  With reverse=True positions are
    # arange(L-1, -1, -1), so row t carries position (L-1) - t.
    table_len = max(max_len, seq_len)
    if reverse:
        position = (table_len - 1) - jnp.arange(seq_len, dtype=jnp.float32)
    else:
        position = jnp.arange(seq_len, dtype=jnp.float32)
    position = position[:, None]
    div_term = jnp.exp(
        jnp.arange(0, d_model, 2, dtype=jnp.float32)
        * -(math.log(10000.0) / d_model))
    angles = position * div_term                          # (seq_len, d_model//2)
    pe = jnp.zeros((seq_len, d_model), dtype=jnp.float32)
    pe = pe.at[:, 0::2].set(jnp.sin(angles))
    pe = pe.at[:, 1::2].set(jnp.cos(angles))
    return pe.astype(dtype)


def _pos_enc_kernel(x_ref, pe_ref, o_ref, *, xscale):
    # x_ref / o_ref: (TB, TR, C) tiles.  pe_ref: (TR, C), broadcast over batch dim.
    o_ref[...] = x_ref[...] * xscale + pe_ref[...][None, :, :]


def _choose_layout(B, T, D, itemsize):
    """Pick a lane-dense (R, C) view of the (T, D) slab plus (TR, TB) tile sizes."""
    N = T * D
    if D % 128 == 0:
        C = D                                   # already lane-dense
    elif N % 128 == 0:
        C = 128                                 # flatten per-batch slab to lane-dense rows
        for cand in (1024, 512, 256):
            if N % cand == 0:
                C = cand
                break
    else:
        C = D                                   # keep (T, D) view; full-extent last dim is legal
    R = N // C

    sublane = max(8, 32 // itemsize)            # 8 (f32) / 16 (bf16) / 32 (i8)
    if R <= sublane:
        TR = R                                  # full extent (always legal)
    else:
        tr = max(sublane, _TILE_TARGET_BYTES // (C * itemsize))
        tr = min(tr, R)
        TR = (tr // sublane) * sublane          # multiple of sublane; partial last block ok

    # Amortize tiny per-batch slabs by stacking several batches per grid step.
    TB = 1
    if TR == R:
        slab_bytes = max(1, R * C * itemsize)
        max_tb = max(1, _TILE_TARGET_BYTES // slab_bytes)
        for d in range(min(B, max_tb), 0, -1):
            if B % d == 0:
                TB = d
                break

    # Ensure sizeable problems produce >=2 grid steps (feed both v7x TensorCores).
    grid_rows = pl.cdiv(R, TR)
    grid_batch = B // TB
    if grid_rows * grid_batch == 1 and B * N * itemsize >= _SPLIT_MIN_BYTES:
        if R >= 2 * sublane:
            TR = max(sublane, ((TR // 2) // sublane) * sublane)
        elif TB % 2 == 0:
            TB //= 2
    return R, C, TR, TB


@functools.partial(
    jax.jit, static_argnames=("d_model", "dropout_rate", "max_len", "reverse"))
def positional_encoding_forward(x, d_model, dropout_rate=0.0, max_len=5000,
                                reverse=False):
    """JAX/Pallas equivalent of PositionalEncoding.forward (eval mode)."""
    B, T, D = x.shape
    assert D == d_model
    xscale = math.sqrt(d_model)

    # Buffer setup (glue): build only the T rows we need; constant-folded under jit.
    pe = _make_pe(T, d_model, max_len, reverse, x.dtype)

    R, C, TR, TB = _choose_layout(B, T, D, x.dtype.itemsize)
    x3 = x.reshape(B, R, C)
    pe2 = pe.reshape(R, C)

    grid = (pl.cdiv(R, TR), B // TB)   # row-tiles OUTER, batch-tiles INNER (pe reuse)

    out3 = pl.pallas_call(
        functools.partial(_pos_enc_kernel, xscale=xscale),
        out_shape=jax.ShapeDtypeStruct((B, R, C), x.dtype),
        grid_spec=pltpu.PrefetchScalarGridSpec(
            num_scalar_prefetch=0,
            grid=grid,
            in_specs=[
                pl.BlockSpec((TB, TR, C), lambda t, b: (b, t, 0)),   # x tile
                pl.BlockSpec((TR, C), lambda t, b: (t, 0)),          # shared pe tile
            ],
            out_specs=pl.BlockSpec((TB, TR, C), lambda t, b: (b, t, 0)),
        ),
        compiler_params=pltpu.CompilerParams(
            dimension_semantics=("parallel", "parallel"),
            vmem_limit_bytes=_VMEM_LIMIT_BYTES),
    )(x3, pe2)

    # TODO(synk): training-mode dropout (torch.nn.Dropout(p=dropout_rate)) is identity
    # in eval mode; only eval semantics are implemented here.  In-place aliasing of the
    # output onto x (input_output_aliases) is intentionally omitted since x is not
    # donated in this standalone script.
    del dropout_rate
    return out3.reshape(B, T, D)


def _reference(x, d_model, max_len=5000, reverse=False):
    pe = _make_pe(x.shape[1], d_model, max_len, reverse, x.dtype)
    return x * math.sqrt(d_model) + pe[None, :, :]


if __name__ == "__main__":
    key = jax.random.PRNGKey(0)
    k1, k2 = jax.random.split(key)

    # Case 1: lane-dense flattened slab + batch blocking (B=2, T=8, D=32).
    B, T, D = 2, 8, 32
    x = jax.random.normal(k1, (B, T, D), dtype=jnp.float32)
    out = jax.block_until_ready(
        positional_encoding_forward(x, d_model=D, dropout_rate=0.0, max_len=5000))
    ref = _reference(x, d_model=D)
    assert out.shape == (B, T, D)
    assert jnp.allclose(out, ref, atol=1e-5, rtol=1e-5), "mismatch vs reference (case 1)"

    # Case 2: ragged D (not a multiple of 128), partial row tiles, reverse positions.
    B2, T2, D2 = 2, 12, 20
    x2 = jax.random.normal(k2, (B2, T2, D2), dtype=jnp.float32)
    out2 = jax.block_until_ready(
        positional_encoding_forward(x2, d_model=D2, dropout_rate=0.1,
                                    max_len=5000, reverse=True))
    ref2 = _reference(x2, d_model=D2, reverse=True)
    assert out2.shape == (B2, T2, D2)
    assert jnp.allclose(out2, ref2, atol=1e-5, rtol=1e-5), "mismatch vs reference (case 2)"

    print("KERNEL_OK")
</pallas_src>

<mosaic_0001>
module attributes {stable_mosaic.version = 11 : i64} {
  func.func @_pos_enc_kernel(%arg0: i32, %arg1: i32, %arg2: memref<2x1x256xf32, #tpu.memory_space<vmem>>, %arg3: memref<1x256xf32, #tpu.memory_space<vmem>>, %arg4: memref<2x1x256xf32, #tpu.memory_space<vmem>>) attributes {dimension_semantics = [#tpu.dimension_semantics<parallel>, #tpu.dimension_semantics<parallel>], iteration_bounds = array<i64: 1, 1>, scalar_prefetch = 0 : i64, scratch_operands = 0 : i64, tpu.core_type = #tpu.core_type<tc>, window_params = [{transform_indices = @transform_0, window_bounds = array<i64: 2, 1, 256>}, {transform_indices = @transform_1, window_bounds = array<i64: 1, 256>}, {transform_indices = @transform_2, window_bounds = array<i64: 2, 1, 256>}]} {
    %c0 = arith.constant 0 : index
    %c0_0 = arith.constant 0 : index
    %c0_1 = arith.constant 0 : index
    %0 = vector.load %arg2[%c0, %c0_0, %c0_1] : memref<2x1x256xf32, #tpu.memory_space<vmem>>, vector<2x1x256xf32>
    %cst = arith.constant 5.65685415 : f32
    %1 = vector.broadcast %cst : f32 to vector<2x1x256xf32>
    %2 = arith.mulf %0, %1 : vector<2x1x256xf32>
    %c0_2 = arith.constant 0 : index
    %c0_3 = arith.constant 0 : index
    %3 = vector.load %arg3[%c0_2, %c0_3] : memref<1x256xf32, #tpu.memory_space<vmem>>, vector<1x256xf32>
    %4 = vector.shape_cast %3 : vector<1x256xf32> to vector<1x1x256xf32>
    %5 = vector.broadcast %4 : vector<1x1x256xf32> to vector<2x1x256xf32>
    %6 = arith.addf %2, %5 : vector<2x1x256xf32>
    %c0_4 = arith.constant 0 : index
    %c0_5 = arith.constant 0 : index
    %c0_6 = arith.constant 0 : index
    %7 = vector.load %arg4[%c0_4, %c0_5, %c0_6] : memref<2x1x256xf32, #tpu.memory_space<vmem>>, vector<2x1x256xf32>
    tpu.vector_store %arg4[%c0_4, %c0_5, %c0_6], %6 {strides = array<i32>} : memref<2x1x256xf32, #tpu.memory_space<vmem>>, vector<2x1x256xf32>,
    return
  }
  func.func @transform_0(%arg0: i32, %arg1: i32) -> (i32, i32, i32) {
    %c0_i32 = arith.constant 0 : i32
    %c0_i32_0 = arith.constant 0 : i32
    return %arg1, %arg0, %c0_i32 : i32, i32, i32
  }
  func.func @transform_1(%arg0: i32, %arg1: i32) -> (i32, i32) {
    %c0_i32 = arith.constant 0 : i32
    %c0_i32_0 = arith.constant 0 : i32
    return %arg0, %c0_i32 : i32, i32
  }
  func.func @transform_2(%arg0: i32, %arg1: i32) -> (i32, i32, i32) {
    %c0_i32 = arith.constant 0 : i32
    %c0_i32_0 = arith.constant 0 : i32
    return %arg1, %arg0, %c0_i32 : i32, i32, i32
  }
}

</mosaic_0001>

<bundles_post_ra>
// kernel: positional_encoding_forward.1
= control target key start
LH: loop header
LB: loop body
LE: loop exit
PB: predicated region body
PF: predicated region fallthrough
CT: control target
= control target key end

     0   :  { %v18_v0 = vlaneseq  ;;  %s58_s0 = inlined_call_operand.vmem [shape: f32[2,1,256], index: 0, kind: input, shape index: {}]   ;;  %s59_s1 = inlined_call_operand.vmem [shape: f32[1,256], index: 1, kind: input, shape index: {}]   ;;  %s60_s2 = inlined_call_operand.vmem [shape: f32[2,1,256], index: 2, kind: output, shape index: {}]  }
   0x1   :  { %v11_v1 = vld [vmem:[%s58_s0] sm:$0x3]  ;;  %v12_v3 = vld [vmem:[%s58_s0 + $0x2] sm:$0x3] }
   0x2   :  { %v15_v2 = vld [vmem:[%s59_s1] sm:$0x3]  ;;  %v13_v4 = vmul.f32 5.656854, %v11_v1  ;;  %v14_v5 = vmul.f32 5.656854, %v12_v3 }
   0x3   :  { %vm20_vm0 = vcmp.lt.s32.totalorder %v18_v0, 256 }
   0x4   :  { %v16_v6 = vadd.f32 %v15_v2, %v13_v4  ;;  %v17_v7 = vadd.f32 %v15_v2, %v14_v5 }
   0x6   :  { %22 = vst.msk [vmem:[%s60_s2] sm:$0x3] %vm20_vm0, %v16_v6  ;;  %23 = vst.msk [vmem:[%s60_s2 + $0x2] sm:$0x3] %vm20_vm0, %v17_v7 }

</bundles_post_ra>
